<compile_context>
chip_gen: v7x
topology: tpu7x:2x2x1
jax: 0.10.0
libtpu: 0.0.40
codegen_flags: <defaults>
</compile_context>

<pallas_src>
import jax
import jax.numpy as jnp
from jax.experimental import pallas as pl
from jax.experimental.pallas import tpu as pltpu

HID = 16  # fixed by the module: nn.Linear(num_features, 16)


def linreg_kernel(x_ref, w1_ref, b1_ref, w2_ref, b2_ref, out_ref, acc_ref):
    """Grid = (batch tiles, K tiles). K (feature) axis is a reduction.

    x_ref  : (TB, TK)   input tile (f32 or bf16)
    w1_ref : (TK, HID)  layer_1 weight slice, (in, out) layout, f32
    b1_ref : (1, HID)   layer_1 bias, f32
    w2_ref : (1, HID)   layer_out weight as a row, f32
    b2_ref : (1, 1)     layer_out bias, f32
    out_ref: (TB, 1)    output tile, f32
    acc_ref: (TB, HID)  f32 accumulator scratch (layer_1 pre-activation)
    """
    k = pl.program_id(1)

    @pl.when(k == 0)
    def _init():
        acc_ref[...] = jnp.zeros_like(acc_ref)

    # layer_1 partial matmul on the MXU, f32 accumulation.
    acc_ref[...] += jnp.dot(x_ref[...], w1_ref[...],
                            preferred_element_type=jnp.float32)

    @pl.when(k == pl.num_programs(1) - 1)
    def _epilogue():
        h = jnp.maximum(acc_ref[...] + b1_ref[...], 0.0)       # bias + ReLU (VPU)
        # layer_out: (TB,16)@(16,1) would waste the MXU and emit a 1-lane
        # result; do it as a VPU multiply + lane reduction instead.
        y = jnp.sum(h * w2_ref[...], axis=-1, keepdims=True) + b2_ref[...]
        out_ref[...] = y.astype(out_ref.dtype)


def _round_up(n, m):
    return ((n + m - 1) // m) * m


def _vmem_block_bytes(rows, cols, itemsize):
    """VMEM footprint of a (rows, cols) block after (8, 128) layout padding."""
    return _round_up(max(rows, 1), 8) * _round_up(max(cols, 1), 128) * itemsize


def _vmem_capacity_bytes():
    try:
        cap = getattr(pltpu.get_tpu_info(), "vmem_capacity_bytes", None)
        if cap:
            return int(cap)
    except Exception:
        pass
    return 64 * 1024 * 1024  # conservative fallback: v7x per-TensorCore VMEM


def _pick_k_tile(num_features):
    if num_features <= 2048:
        return num_features                 # single K step
    for tk in (2048, 1024, 512, 256, 128):  # must divide F exactly (no masked K)
        if num_features % tk == 0:
            return tk
    return num_features                     # fallback: one (big) K block


def _kernel_vmem_bytes(tb, tk, x_itemsize):
    return (2 * _vmem_block_bytes(tb, tk, x_itemsize)   # double-buffered x tile
            + 2 * _vmem_block_bytes(tk, HID, 4)         # double-buffered w1 tile
            + _vmem_block_bytes(tb, HID, 4)             # f32 accumulator scratch
            + 2 * _vmem_block_bytes(tb, 1, 4)           # double-buffered out tile
            + 4 * _vmem_block_bytes(1, HID, 4)          # biases / w2 row
            + (2 << 20))                                # compiler slack


def _pick_batch_tile(batch, tk, x_itemsize, vmem_budget):
    tb = 8
    for cand in (8192, 4096, 2048, 1024, 512, 256, 128, 64, 32, 16, 8):
        if _kernel_vmem_bytes(cand, tk, x_itemsize) <= vmem_budget:
            tb = cand
            break
    if tb >= batch:
        if batch >= 1024:
            # v7x megacore: keep >= 2 "parallel" batch steps so both
            # TensorCores stream half the batch each.
            tb = _round_up(pl.cdiv(batch, 2), 8)
        else:
            tb = batch                       # block == full array dim (legal)
    return tb


def linear_regression_forward(x, params, *, batch_tile=None, k_tile=None):
    """Pallas forward. x: (B, num_features) f32/bf16 -> (B, 1) f32."""
    B, F = x.shape
    assert params["w1"].shape == (F, HID)

    TK = k_tile if k_tile is not None else _pick_k_tile(F)
    assert F % TK == 0, "k_tile must divide num_features"

    cap = _vmem_capacity_bytes()
    budget = min(cap // 2, 64 << 20)         # headroom vs. generation capacity
    x_itemsize = jnp.dtype(x.dtype).itemsize
    TB = (batch_tile if batch_tile is not None
          else _pick_batch_tile(B, TK, x_itemsize, budget))

    needed = _kernel_vmem_bytes(TB, TK, x_itemsize)
    vmem_limit = int(min(cap, max(needed + (4 << 20), 32 << 20)))

    grid = (pl.cdiv(B, TB), F // TK)

    cost = pl.CostEstimate(
        flops=2 * B * F * HID + 4 * B * HID,
        transcendentals=0,
        bytes_accessed=B * F * x_itemsize + F * HID * 4 + B * 4 + (2 * HID + 1) * 4,
    )

    return pl.pallas_call(
        linreg_kernel,
        out_shape=jax.ShapeDtypeStruct((B, 1), jnp.float32),
        grid=grid,
        in_specs=[
            pl.BlockSpec((TB, TK), lambda i, k: (i, k)),    # x: batch x feature tiles
            pl.BlockSpec((TK, HID), lambda i, k: (k, 0)),   # w1: feature tiles
            pl.BlockSpec((1, HID), lambda i, k: (0, 0)),    # b1: resident
            pl.BlockSpec((1, HID), lambda i, k: (0, 0)),    # w2 row: resident
            pl.BlockSpec((1, 1), lambda i, k: (0, 0)),      # b2: resident
        ],
        out_specs=pl.BlockSpec((TB, 1), lambda i, k: (i, 0)),
        scratch_shapes=[pltpu.VMEM((TB, HID), jnp.float32)],
        compiler_params=pltpu.CompilerParams(
            dimension_semantics=("parallel", "arbitrary"),  # batch parallel, K reduction
            vmem_limit_bytes=vmem_limit,
        ),
        cost_estimate=cost,
    )(x, params["w1"], params["b1"], params["w2"], params["b2"])


def init_params(key, num_features):
    """Deterministic init mimicking PyTorch's default nn.Linear init (f32)."""
    ks = jax.random.split(key, 4)

    def uni(k, shape, fan_in):
        bound = 1.0 / jnp.sqrt(float(fan_in))
        return jax.random.uniform(k, shape, jnp.float32, -bound, bound)

    return dict(
        w1=uni(ks[0], (num_features, HID), num_features),   # stored (in, out)
        b1=uni(ks[1], (1, HID), num_features),
        w2=uni(ks[2], (1, HID), HID),                        # layer_out weight as a row
        b2=uni(ks[3], (1, 1), HID),
    )


def reference_forward(x, p):
    """Plain-JAX f32 reference mirroring the PyTorch module semantics."""
    h = jnp.dot(x.astype(jnp.float32), p["w1"],
                precision=jax.lax.Precision.HIGHEST) + p["b1"]
    h = jnp.maximum(h, 0.0)
    return jnp.dot(h, p["w2"].T, precision=jax.lax.Precision.HIGHEST) + p["b2"]


if __name__ == "__main__":
    # Primary check: small shapes consistent with the module (batch=2, F=32).
    B, NUM_FEATURES = 2, 32
    key = jax.random.PRNGKey(0)
    k_x, k_p, k_x2, k_p2 = jax.random.split(key, 4)

    x = jax.random.normal(k_x, (B, NUM_FEATURES), jnp.float32)
    params = init_params(k_p, NUM_FEATURES)

    out = jax.block_until_ready(linear_regression_forward(x, params))
    assert out.shape == (B, 1)
    ref = reference_forward(x, params)
    assert jnp.allclose(out, ref, atol=2e-3, rtol=2e-3), "mismatch vs f32 module"

    # Secondary check: exercises the ragged last batch block (no wrapper pad),
    # multiple parallel batch tiles, and the K-axis accumulation path.
    B2, F2 = 300, 256
    x2 = jax.random.normal(k_x2, (B2, F2), jnp.float32)
    p2 = init_params(k_p2, F2)
    out2 = jax.block_until_ready(
        linear_regression_forward(x2, p2, batch_tile=128, k_tile=128))
    assert out2.shape == (B2, 1)
    ref2 = reference_forward(x2, p2)
    assert jnp.allclose(out2, ref2, atol=2e-3, rtol=2e-3), "mismatch (tiled path)"

    print("KERNEL_OK")
</pallas_src>

<mosaic_0001>
module attributes {stable_mosaic.version = 11 : i64} {
  func.func @linreg_kernel(%arg0: i32, %arg1: i32, %arg2: memref<2x32xf32, #tpu.memory_space<vmem>>, %arg3: memref<32x16xf32, #tpu.memory_space<vmem>>, %arg4: memref<1x16xf32, #tpu.memory_space<vmem>>, %arg5: memref<1x16xf32, #tpu.memory_space<vmem>>, %arg6: memref<1x1xf32, #tpu.memory_space<vmem>>, %arg7: memref<2x1xf32, #tpu.memory_space<vmem>>, %arg8: memref<2x16xf32, #tpu.memory_space<vmem>>) attributes {dimension_semantics = [#tpu.dimension_semantics<parallel>, #tpu.dimension_semantics<arbitrary>], iteration_bounds = array<i64: 1, 1>, scalar_prefetch = 0 : i64, scratch_operands = 1 : i64, tpu.core_type = #tpu.core_type<tc>, window_params = [{transform_indices = @transform_0, window_bounds = array<i64: 2, 32>}, {transform_indices = @transform_1, window_bounds = array<i64: 32, 16>}, {pipeline_mode = #tpu.pipeline_mode<synchronous>, transform_indices = @transform_2, window_bounds = array<i64: 1, 16>}, {pipeline_mode = #tpu.pipeline_mode<synchronous>, transform_indices = @transform_3, window_bounds = array<i64: 1, 16>}, {pipeline_mode = #tpu.pipeline_mode<synchronous>, transform_indices = @transform_4, window_bounds = array<i64: 1, 1>}, {transform_indices = @transform_5, window_bounds = array<i64: 2, 1>}]} {
    %c0_i32 = arith.constant 0 : i32
    %0 = arith.cmpi eq, %arg1, %c0_i32 : i32
    %1 = arith.extui %0 : i1 to i32
    %c0_i32_0 = arith.constant 0 : i32
    %2 = arith.cmpi ne, %1, %c0_i32_0 : i32
    scf.if %2 {
      %cst_10 = arith.constant 0.000000e+00 : f32
      %12 = vector.broadcast %cst_10 : f32 to vector<2x16xf32>
      %c0_11 = arith.constant 0 : index
      %c0_12 = arith.constant 0 : index
      %13 = vector.load %arg8[%c0_11, %c0_12] : memref<2x16xf32, #tpu.memory_space<vmem>>, vector<2x16xf32>
      tpu.vector_store %arg8[%c0_11, %c0_12], %12 {strides = array<i32>} : memref<2x16xf32, #tpu.memory_space<vmem>>, vector<2x16xf32>,
    } else {
    }
    %c0 = arith.constant 0 : index
    %c0_1 = arith.constant 0 : index
    %3 = vector.load %arg8[%c0, %c0_1] : memref<2x16xf32, #tpu.memory_space<vmem>>, vector<2x16xf32>
    %c0_2 = arith.constant 0 : index
    %c0_3 = arith.constant 0 : index
    %4 = vector.load %arg2[%c0_2, %c0_3] : memref<2x32xf32, #tpu.memory_space<vmem>>, vector<2x32xf32>
    %c0_4 = arith.constant 0 : index
    %c0_5 = arith.constant 0 : index
    %5 = vector.load %arg3[%c0_4, %c0_5] : memref<32x16xf32, #tpu.memory_space<vmem>>, vector<32x16xf32>
    %cst = arith.constant dense<0.000000e+00> : vector<2x16xf32>
    %6 = tpu.matmul %4, %5, %cst {dimension_numbers = #tpu.dot_dimension_numbers<[1], [0], [0], [1], [0, 0, 1, 1], [], []>} : vector<2x32xf32>, vector<32x16xf32>, vector<2x16xf32> -> vector<2x16xf32>
    %7 = arith.addf %3, %6 : vector<2x16xf32>
    %c0_6 = arith.constant 0 : index
    %c0_7 = arith.constant 0 : index
    %8 = vector.load %arg8[%c0_6, %c0_7] : memref<2x16xf32, #tpu.memory_space<vmem>>, vector<2x16xf32>
    tpu.vector_store %arg8[%c0_6, %c0_7], %7 {strides = array<i32>} : memref<2x16xf32, #tpu.memory_space<vmem>>, vector<2x16xf32>,
    %c0_i32_8 = arith.constant 0 : i32
    %9 = arith.cmpi eq, %arg1, %c0_i32_8 : i32
    %10 = arith.extui %9 : i1 to i32
    %c0_i32_9 = arith.constant 0 : i32
    %11 = arith.cmpi ne, %10, %c0_i32_9 : i32
    scf.if %11 {
      %c0_10 = arith.constant 0 : index
      %c0_11 = arith.constant 0 : index
      %12 = vector.load %arg8[%c0_10, %c0_11] : memref<2x16xf32, #tpu.memory_space<vmem>>, vector<2x16xf32>
      %c0_12 = arith.constant 0 : index
      %c0_13 = arith.constant 0 : index
      %13 = vector.load %arg4[%c0_12, %c0_13] : memref<1x16xf32, #tpu.memory_space<vmem>>, vector<1x16xf32>
      %14 = vector.broadcast %13 : vector<1x16xf32> to vector<2x16xf32>
      %15 = arith.addf %12, %14 : vector<2x16xf32>
      %cst_14 = arith.constant 0.000000e+00 : f32
      %16 = vector.broadcast %cst_14 : f32 to vector<2x16xf32>
      %17 = arith.maximumf %15, %16 : vector<2x16xf32>
      %c0_15 = arith.constant 0 : index
      %c0_16 = arith.constant 0 : index
      %18 = vector.load %arg5[%c0_15, %c0_16] : memref<1x16xf32, #tpu.memory_space<vmem>>, vector<1x16xf32>
      %19 = vector.broadcast %18 : vector<1x16xf32> to vector<2x16xf32>
      %20 = arith.mulf %17, %19 : vector<2x16xf32>
      %cst_17 = arith.constant dense<0.000000e+00> : vector<2xf32>
      %21 = vector.multi_reduction <add>, %20, %cst_17 [1] : vector<2x16xf32> to vector<2xf32>
      %22 = vector.shape_cast %21 : vector<2xf32> to vector<2x1xf32>
      %c0_18 = arith.constant 0 : index
      %c0_19 = arith.constant 0 : index
      %23 = vector.load %arg6[%c0_18, %c0_19] : memref<1x1xf32, #tpu.memory_space<vmem>>, vector<1x1xf32>
      %24 = vector.broadcast %23 : vector<1x1xf32> to vector<2x1xf32>
      %25 = arith.addf %22, %24 : vector<2x1xf32>
      %c0_20 = arith.constant 0 : index
      %c0_21 = arith.constant 0 : index
      %26 = vector.load %arg7[%c0_20, %c0_21] : memref<2x1xf32, #tpu.memory_space<vmem>>, vector<2x1xf32>
      tpu.vector_store %arg7[%c0_20, %c0_21], %25 {strides = array<i32>} : memref<2x1xf32, #tpu.memory_space<vmem>>, vector<2x1xf32>,
    } else {
    }
    return
  }
  func.func @transform_0(%arg0: i32, %arg1: i32) -> (i32, i32) {
    %c0_i32 = arith.constant 0 : i32
    return %arg0, %arg1 : i32, i32
  }
  func.func @transform_1(%arg0: i32, %arg1: i32) -> (i32, i32) {
    %c0_i32 = arith.constant 0 : i32
    %c0_i32_0 = arith.constant 0 : i32
    return %arg1, %c0_i32 : i32, i32
  }
  func.func @transform_2(%arg0: i32, %arg1: i32) -> (i32, i32) {
    %c0_i32 = arith.constant 0 : i32
    %c0_i32_0 = arith.constant 0 : i32
    %c0_i32_1 = arith.constant 0 : i32
    return %c0_i32, %c0_i32_0 : i32, i32
  }
  func.func @transform_3(%arg0: i32, %arg1: i32) -> (i32, i32) {
    %c0_i32 = arith.constant 0 : i32
    %c0_i32_0 = arith.constant 0 : i32
    %c0_i32_1 = arith.constant 0 : i32
    return %c0_i32, %c0_i32_0 : i32, i32
  }
  func.func @transform_4(%arg0: i32, %arg1: i32) -> (i32, i32) {
    %c0_i32 = arith.constant 0 : i32
    %c0_i32_0 = arith.constant 0 : i32
    %c0_i32_1 = arith.constant 0 : i32
    return %c0_i32, %c0_i32_0 : i32, i32
  }
  func.func @transform_5(%arg0: i32, %arg1: i32) -> (i32, i32) {
    %c0_i32 = arith.constant 0 : i32
    %c0_i32_0 = arith.constant 0 : i32
    return %arg0, %c0_i32 : i32, i32
  }
}

</mosaic_0001>

<bundles_post_ra>
// kernel: tpu_custom_call.1
= control target key start
LH: loop header
LB: loop body
LE: loop exit
PB: predicated region body
PF: predicated region fallthrough
CT: control target
= control target key end

     0   :  { %vm26_vm0 = vcmask 123904   ;;  %v178_v0 = vmov 0.0|0.0   ;;  %v179_v4 = vmov 0.0   ;;  %vm180_vm1 = vmmov 0   ;;  %s241_s1 = inlined_call_operand.vmem [shape: f32[32,16], index: 1, kind: input, shape index: {}]   ;;  %s242_s0 = inlined_call_operand.vmem [shape: f32[2,32], index: 0, kind: input, shape index: {}]   ;;  %s243_s4 = inlined_call_operand.<no memory space> [shape: f32[1,1], index: 4, kind: input, shape index: {}]   ;;  %s244_s2 = inlined_call_operand.vmem [shape: f32[1,16], index: 2, kind: input, shape index: {}]   ;;  %s245_s3 = inlined_call_operand.vmem [shape: f32[1,16], index: 3, kind: input, shape index: {}]   ;;  %s246_s5 = inlined_call_operand.vmem [shape: f32[2,1], index: 5, kind: output, shape index: {}]  }
   0x1   :  { %169 = vmatprep.subr.bf16.mxu0 %v178_v0  ;;  %v30_v1 = vld [vmem:[%s241_s1] sm:$0xff]  ;;  %v31_v2 = vld [vmem:[%s241_s1 + $0x8] sm:$0xff]  ;;  %v32_v3 = vld [vmem:[%s241_s1 + $0x10] sm:$0xff]  ;;  %27 = vst.msk [vmem:[#allocation2] sm:$0x3] %vm26_vm0, %v179_v4  ;;  %166 = vmatprep.mubr.msk.f32.mxu0 %vm180_vm1, %v179_v4  ;;  %vm34_vm2 = vcmask 261120   ;;  %v10_v9 = vstv %s243_s4 }
   0x2   :  { %v170_v5 = vpack.c.bf16 %v31_v2, %v30_v1  ;;  %v33_v6 = vld [vmem:[%s241_s1 + $0x18] sm:$0xff]  ;;  %v29_v8 = vld [vmem:[%s242_s0] sm:$0x3]  ;;  %11 = vst [vmem:[#allocation3] sm:$0x1] %v10_v9  ;;  %vm143_vm3 = vcmask 1024  }
   0x3   :  { %v173_v7 = vpack.c.bf16 %v33_v6, %v32_v3  ;;  %v150_v14 = vld [vmem:[%s244_s2] ss:$0 sm:$0xff] }
   0x4   :  { %171 = vmatpush3.bf16.msra.mxu0 %v170_v5  ;;  %v151_v17 = vld [vmem:[%s245_s3] ss:$0 sm:$0xff] }
   0x5   :  { %172 = vmatprep.subr.bf16.mxu0 %v178_v0 }
   0x8   :  { %174 = vmatpush3.bf16.msra.mxu0 %v173_v7  ;;  %v28_v10 = vld [vmem:[#allocation2] sm:$0x3] }
   0x9   :  { %v152_v21 = vld [vmem:[#allocation3] ss:$0 sm:$0xff] }
   0xb   :  { %167 = vmatmul.mubr.msk.f32.vlgmr.msra.gmra.mrb[0].mxu0 %vm34_vm2, %v29_v8 }
  0xde   :  { %v104_v11 = vpop.f32.mrb[0].mxu0 }
  0xdf   :  { %v108_v12 = vadd.f32 %v104_v11, %v28_v10  ;;  %v168_v13 = vpop.f32.mrb[1].mxu0 }
  0xe1   :  { %110 = vst.msk [vmem:[#allocation2] sm:$0x3] %vm26_vm0, %v108_v12 }
  0xe8   :  { %v114_v15 = vld [vmem:[#allocation2] sm:$0x3] }
  0xe9   :  { %v122_v16 = vadd.f32 %v150_v14, %v114_v15 }
  0xeb   :  { %v123_v18 = vmax.f32 %v122_v16, 0.0 }
  0xed   :  { %v131_v19 = vmul.f32 %v151_v17, %v123_v18 }
  0xef   :  { %v132_v20 = vsel %vm26_vm0, %v131_v19, 0.0 }
  0xf0   :  { %133 = vadd.xlane.f32.xlu0 %v132_v20 }
 0x17d   :  { %v134_v22 = vpop.xlane.xlu0 %133 }
 0x17e   :  { %v142_v23 = vadd.f32 %v152_v21, %v134_v22 }
 0x180   :  { %144 = vst.msk [vmem:[%s246_s5] sm:$0x3] %vm143_vm3, %v142_v23 }

</bundles_post_ra>
